<compile_context>
chip_gen: v7x
topology: tpu7x:2x2x1
jax: 0.10.0
libtpu: 0.0.40
codegen_flags: <defaults>
</compile_context>

<pallas_src>
import functools

import jax
import jax.numpy as jnp
from jax.experimental import pallas as pl
from jax.experimental.pallas import tpu as pltpu


def _interp_matrix(n_in: int, n_out: int, dtype=jnp.float32) -> jnp.ndarray:
    """1-D bilinear interpolation matrix (align_corners=False, PyTorch semantics)."""
    dst = jnp.arange(n_out, dtype=jnp.float32)
    scale = n_in / n_out
    src = jnp.clip((dst + 0.5) * scale - 0.5, 0.0, float(n_in - 1))
    lo = jnp.floor(src).astype(jnp.int32)
    hi = jnp.minimum(lo + 1, n_in - 1)
    w_hi = src - lo.astype(jnp.float32)
    w_lo = 1.0 - w_hi
    rows = jnp.arange(n_out)
    m = jnp.zeros((n_out, n_in), dtype=jnp.float32)
    m = m.at[rows, lo].add(w_lo)
    m = m.at[rows, hi].add(w_hi)
    return m.astype(dtype)


def _pick_plane_batch(nc, h_in, h_out, w_in, w_out, itemsize,
                      max_block_bytes=4 << 20, max_kron_bytes=2 << 20):
    """Largest per-step plane batch B that (a) divides N*C, (b) keeps block shapes legal
    ((8,128) rule), and (c) keeps double-buffered blocks + kron weights VMEM-safe on v7x."""
    valid, fitting = [], []
    for b in range(1, nc + 1):
        if nc % b:
            continue
        full = (b == nc)
        if not full and ((b * h_in) % 8 or (b * h_out) % 8):
            continue
        valid.append(b)
        kron_bytes = (b * h_out) * (b * h_in) * 4
        blk_bytes = b * h_in * w_in * itemsize + b * h_out * w_out * itemsize
        if kron_bytes <= max_kron_bytes and blk_bytes <= max_block_bytes:
            fitting.append(b)
    if fitting:
        return max(fitting)
    return min(valid) if valid else nc


def _upsample_kernel(whb_ref, wwt_ref, x_ref, o_ref):
    # whb_ref : (B*H_out, B*H_in)  block-diagonal kron(I_B, Wh) row-interp matrix
    # wwt_ref : (W_in,  W_out)     transposed column-interp matrix
    # x_ref   : (B*H_in, W_in)     B image planes stacked along rows
    # o_ref   : (B*H_out, W_out)
    t = jnp.dot(x_ref[...], wwt_ref[...], preferred_element_type=jnp.float32)
    o = jnp.dot(whb_ref[...], t, preferred_element_type=jnp.float32)
    o_ref[...] = o.astype(o_ref.dtype)


@functools.partial(jax.jit, static_argnames=("factor",))
def upsample_bilinear(x: jnp.ndarray, factor: int = 2) -> jnp.ndarray:
    """Bilinear upsample of an NCHW tensor by an integer factor (align_corners=False)."""
    n, c, h_in, w_in = x.shape
    h_out, w_out = h_in * factor, w_in * factor
    nc = n * c

    # bf16 inputs use bf16 weights (native MXU path); otherwise f32. Accumulation is f32.
    wdtype = x.dtype if x.dtype == jnp.bfloat16 else jnp.float32
    wh = _interp_matrix(h_in, h_out, wdtype)                       # (H_out, H_in)
    wwt = _interp_matrix(w_in, w_out, jnp.float32).T.astype(wdtype)  # (W_in, W_out)

    b = _pick_plane_batch(nc, h_in, h_out, w_in, w_out, x.dtype.itemsize)
    n_steps = nc // b

    whb = jnp.kron(jnp.eye(b, dtype=wdtype), wh)                   # (B*H_out, B*H_in)

    x2 = x.reshape(nc * h_in, w_in)                                # flattened plane rows

    flops = 2 * n_steps * (b * h_in * w_in * w_out + (b * h_out) * (b * h_in) * w_out)
    bytes_accessed = (x2.size * x2.dtype.itemsize
                      + nc * h_out * w_out * x.dtype.itemsize
                      + whb.size * whb.dtype.itemsize
                      + wwt.size * wwt.dtype.itemsize)

    out2 = pl.pallas_call(
        _upsample_kernel,
        out_shape=jax.ShapeDtypeStruct((nc * h_out, w_out), x.dtype),
        grid_spec=pltpu.PrefetchScalarGridSpec(
            num_scalar_prefetch=0,
            grid=(n_steps,),
            in_specs=[
                # constant index_map -> weights stay resident across grid steps
                pl.BlockSpec((b * h_out, b * h_in), lambda i: (0, 0)),
                pl.BlockSpec((w_in, w_out), lambda i: (0, 0)),
                pl.BlockSpec((b * h_in, w_in), lambda i: (i, 0)),
            ],
            out_specs=pl.BlockSpec((b * h_out, w_out), lambda i: (i, 0)),
        ),
        compiler_params=pltpu.CompilerParams(
            dimension_semantics=("parallel",),
            vmem_limit_bytes=32 * 1024 * 1024),
        cost_estimate=pl.CostEstimate(
            flops=flops, transcendentals=0, bytes_accessed=bytes_accessed),
    )(whb, wwt, x2)

    return out2.reshape(n, c, h_out, w_out)


def _reference_bilinear(x, factor=2):
    """Independent gather-based reference replicating F.interpolate(mode='bilinear',
    align_corners=False) — different code path from the kernel's matmul formulation."""
    n, c, h_in, w_in = x.shape
    h_out, w_out = h_in * factor, w_in * factor

    def coords(n_in, n_out):
        src = (jnp.arange(n_out, dtype=jnp.float32) + 0.5) * (n_in / n_out) - 0.5
        src = jnp.clip(src, 0.0, float(n_in - 1))
        lo = jnp.floor(src).astype(jnp.int32)
        hi = jnp.minimum(lo + 1, n_in - 1)
        frac = src - lo.astype(jnp.float32)
        return lo, hi, frac

    hlo, hhi, hf = coords(h_in, h_out)
    wlo, whi, wf = coords(w_in, w_out)

    top = x[:, :, hlo, :]
    bot = x[:, :, hhi, :]
    rows = top * (1.0 - hf)[None, None, :, None] + bot * hf[None, None, :, None]
    left = rows[:, :, :, wlo]
    right = rows[:, :, :, whi]
    return left * (1.0 - wf)[None, None, None, :] + right * wf[None, None, None, :]


if __name__ == "__main__":
    key = jax.random.PRNGKey(0)
    x = jax.random.normal(key, (2, 4, 16, 16), dtype=jnp.float32)

    out = jax.block_until_ready(upsample_bilinear(x, factor=2))
    assert out.shape == (2, 4, 32, 32), out.shape

    ref = _reference_bilinear(x, factor=2)
    err = float(jnp.max(jnp.abs(out - ref)))
    assert jnp.allclose(out, ref, atol=1e-4, rtol=1e-4), err

    print("KERNEL_OK")
</pallas_src>

<mosaic_0001>
module attributes {stable_mosaic.version = 11 : i64} {
  func.func private @main(%arg0: i32) attributes {dimension_semantics = [#tpu.dimension_semantics<core_parallel>], iteration_bounds = array<i64: 2>, tpu.core_type = #tpu.core_type<sc_scalar_subcore>, window_params = []} {
    return
  }
}

module attributes {stable_mosaic.version = 11 : i64} {
  func.func private @main(%arg0: i32) attributes {dimension_semantics = [#tpu.dimension_semantics<core_parallel>], iteration_bounds = array<i64: 2>, tpu.core_type = #tpu.core_type<sc_scalar_subcore>, window_params = []} {
    return
  }
}

module attributes {stable_mosaic.version = 11 : i64} {
  func.func @_upsample_kernel(%arg0: i32, %arg1: memref<256x128xf32, #tpu.memory_space<vmem>>, %arg2: memref<16x32xf32, #tpu.memory_space<vmem>>, %arg3: memref<128x16xf32, #tpu.memory_space<vmem>>, %arg4: memref<256x32xf32, #tpu.memory_space<vmem>>) attributes {dimension_semantics = [#tpu.dimension_semantics<parallel>], iteration_bounds = array<i64: 1>, scalar_prefetch = 0 : i64, scratch_operands = 0 : i64, tpu.core_type = #tpu.core_type<tc>, window_params = [{pipeline_mode = #tpu.pipeline_mode<synchronous>, transform_indices = @transform_0, window_bounds = array<i64: 256, 128>}, {pipeline_mode = #tpu.pipeline_mode<synchronous>, transform_indices = @transform_1, window_bounds = array<i64: 16, 32>}, {transform_indices = @transform_2, window_bounds = array<i64: 128, 16>}, {transform_indices = @transform_3, window_bounds = array<i64: 256, 32>}]} {
    %c0 = arith.constant 0 : index
    %c0_0 = arith.constant 0 : index
    %0 = vector.load %arg3[%c0, %c0_0] : memref<128x16xf32, #tpu.memory_space<vmem>>, vector<128x16xf32>
    %c0_1 = arith.constant 0 : index
    %c0_2 = arith.constant 0 : index
    %1 = vector.load %arg2[%c0_1, %c0_2] : memref<16x32xf32, #tpu.memory_space<vmem>>, vector<16x32xf32>
    %cst = arith.constant dense<0.000000e+00> : vector<128x32xf32>
    %2 = tpu.matmul %0, %1, %cst {dimension_numbers = #tpu.dot_dimension_numbers<[1], [0], [0], [1], [0, 0, 1, 1], [], []>} : vector<128x16xf32>, vector<16x32xf32>, vector<128x32xf32> -> vector<128x32xf32>
    %c0_3 = arith.constant 0 : index
    %c0_4 = arith.constant 0 : index
    %3 = vector.load %arg1[%c0_3, %c0_4] : memref<256x128xf32, #tpu.memory_space<vmem>>, vector<256x128xf32>
    %cst_5 = arith.constant dense<0.000000e+00> : vector<256x32xf32>
    %4 = tpu.matmul %3, %2, %cst_5 {dimension_numbers = #tpu.dot_dimension_numbers<[1], [0], [0], [1], [0, 0, 1, 1], [], []>} : vector<256x128xf32>, vector<128x32xf32>, vector<256x32xf32> -> vector<256x32xf32>
    %c0_6 = arith.constant 0 : index
    %c0_7 = arith.constant 0 : index
    %5 = vector.load %arg4[%c0_6, %c0_7] : memref<256x32xf32, #tpu.memory_space<vmem>>, vector<256x32xf32>
    tpu.vector_store %arg4[%c0_6, %c0_7], %4 {strides = array<i32>} : memref<256x32xf32, #tpu.memory_space<vmem>>, vector<256x32xf32>,
    return
  }
  func.func @transform_0(%arg0: i32) -> (i32, i32) {
    %c0_i32 = arith.constant 0 : i32
    %c0_i32_0 = arith.constant 0 : i32
    %c0_i32_1 = arith.constant 0 : i32
    return %c0_i32, %c0_i32_0 : i32, i32
  }
  func.func @transform_1(%arg0: i32) -> (i32, i32) {
    %c0_i32 = arith.constant 0 : i32
    %c0_i32_0 = arith.constant 0 : i32
    %c0_i32_1 = arith.constant 0 : i32
    return %c0_i32, %c0_i32_0 : i32, i32
  }
  func.func @transform_2(%arg0: i32) -> (i32, i32) {
    %c0_i32 = arith.constant 0 : i32
    %c0_i32_0 = arith.constant 0 : i32
    return %arg0, %c0_i32 : i32, i32
  }
  func.func @transform_3(%arg0: i32) -> (i32, i32) {
    %c0_i32 = arith.constant 0 : i32
    %c0_i32_0 = arith.constant 0 : i32
    return %arg0, %c0_i32 : i32, i32
  }
}

</mosaic_0001>

<bundles_post_ra>
// kernel: upsample_bilinear.1
= control target key start
LH: loop header
LB: loop body
LE: loop exit
PB: predicated region body
PF: predicated region fallthrough
CT: control target
= control target key end

     0   :  { %vm33_vm0 = vcmask 130048   ;;  %s1035_s0 = inlined_call_operand.vmem [shape: f32[256,128], index: 0, kind: input, shape index: {}]   ;;  %s1036_s1 = inlined_call_operand.vmem [shape: f32[16,32], index: 1, kind: input, shape index: {}]   ;;  %s1037_s2 = inlined_call_operand.vmem [shape: f32[128,16], index: 2, kind: input, shape index: {}]   ;;  %s1038_s3 = inlined_call_operand.hbm [shape: f32[256,32], index: 3, kind: output, shape index: {}]  }
   0x1   :  { %v31_v0 = vld [vmem:[%s1036_s1] sm:$0xff]  ;;  %v32_v1 = vld [vmem:[%s1036_s1 + $0x8] sm:$0xff]  ;;  %v17_v5 = vld [vmem:[%s1037_s2 + $0x10] sm:$0xff] }
   0x2   :  { %v15_v2 = vld [vmem:[%s1037_s2] sm:$0xff]  ;;  %v723_v3 = vpack.c.bf16 %v32_v1, %v31_v0  ;;  %v16_v4 = vld [vmem:[%s1037_s2 + $0x8] sm:$0xff] }
   0x3   :  { %619 = vmatprep.mubr.msk.f32.mxu0 %vm33_vm0, %v15_v2 }
   0x4   :  { %724 = vmatprep.subr.bf16.mxu0 %v723_v3 }
   0x5   :  { %726 = vmatpush3.bf16.msra.mxu0 %v723_v3 }
   0x6   :  { %8 = vsyncpa [#allocation3], 0  ;;  %v18_v6 = vld [vmem:[%s1037_s2 + $0x18] sm:$0xff]  ;;  %v19_v7 = vld [vmem:[%s1037_s2 + $0x20] sm:$0xff]  ;;  %vm484_vm1 = vcmask 261120  }
   0x7   :  { %v20_v8 = vld [vmem:[%s1037_s2 + $0x28] sm:$0xff]  ;;  %v21_v9 = vld [vmem:[%s1037_s2 + $0x30] sm:$0xff]  ;;  %v22_v10 = vld [vmem:[%s1037_s2 + $0x38] sm:$0xff] }
   0x8   :  { %620 = vmatmul.mubr.msk.f32.vlgmr.msra.gmra.mrb[0].mxu0 %vm33_vm0, %v16_v4  ;;  %v23_v11 = vld [vmem:[%s1037_s2 + $0x40] sm:$0xff]  ;;  %v24_v12 = vld [vmem:[%s1037_s2 + $0x48] sm:$0xff]  ;;  %v25_v13 = vld [vmem:[%s1037_s2 + $0x50] sm:$0xff] }
   0x9   :  { %622 = vmatprep.mubr.msk.f32.mxu0 %vm33_vm0, %v17_v5  ;;  %v26_v14 = vld [vmem:[%s1037_s2 + $0x58] sm:$0xff]  ;;  %v27_v15 = vld [vmem:[%s1037_s2 + $0x60] sm:$0xff]  ;;  %v28_v16 = vld [vmem:[%s1037_s2 + $0x68] sm:$0xff] }
   0xa   :  { %v29_v17 = vld [vmem:[%s1037_s2 + $0x70] sm:$0xff]  ;;  %v30_v18 = vld [vmem:[%s1037_s2 + $0x78] sm:$0xff]  ;;  %v227_v20 = vld [vmem:[%s1035_s0] sm:$0xff] }
   0xb   :  { %v241_v19 = vld [vmem:[%s1035_s0 + $0x70] sm:$0xff]  ;;  %v242_v45 = vld [vmem:[%s1035_s0 + $0x78] sm:$0xff]  ;;  %v228_v46 = vld [vmem:[%s1035_s0 + $0x8] sm:$0xff] }
   0xc   :  { %623 = vmatmul.mubr.msk.f32.gmra.mrb[2].mxu0 %vm33_vm0, %v18_v6  ;;  %696 = vmatprep.mubr.f32.mxu1 %v241_v19  ;;  %v243_v47 = vld [vmem:[%s1035_s0 + $0x80] sm:$0xff]  ;;  %v229_v48 = vld [vmem:[%s1035_s0 + $0x10] sm:$0xff]  ;;  %v244_v49 = vld [vmem:[%s1035_s0 + $0x88] sm:$0xff] }
   0xd   :  { %625 = vmatprep.mubr.msk.f32.mxu0 %vm33_vm0, %v19_v7  ;;  %v230_v50 = vld [vmem:[%s1035_s0 + $0x18] sm:$0xff]  ;;  %v245_v51 = vld [vmem:[%s1035_s0 + $0x90] sm:$0xff]  ;;  %v231_v52 = vld [vmem:[%s1035_s0 + $0x20] sm:$0xff] }
   0xe   :  { %v246_v53 = vld [vmem:[%s1035_s0 + $0x98] sm:$0xff]  ;;  %v232_v54 = vld [vmem:[%s1035_s0 + $0x28] sm:$0xff]  ;;  %v247_v55 = vld [vmem:[%s1035_s0 + $0xa0] sm:$0xff] }
   0xf   :  { %v233_v56 = vld [vmem:[%s1035_s0 + $0x30] sm:$0xff]  ;;  %v248_v57 = vld [vmem:[%s1035_s0 + $0xa8] sm:$0xff]  ;;  %v234_v58 = vld [vmem:[%s1035_s0 + $0x38] sm:$0xff] }
  0x10   :  { %626 = vmatmul.mubr.msk.f32.gmra.mrb[4].mxu0 %vm33_vm0, %v20_v8  ;;  %v249_v59 = vld [vmem:[%s1035_s0 + $0xb0] sm:$0xff]  ;;  %v235_v60 = vld [vmem:[%s1035_s0 + $0x40] sm:$0xff]  ;;  %v250_v61 = vld [vmem:[%s1035_s0 + $0xb8] sm:$0xff] }
  0x11   :  { %628 = vmatprep.mubr.msk.f32.mxu0 %vm33_vm0, %v21_v9  ;;  %v236_v62 = vld [vmem:[%s1035_s0 + $0x48] sm:$0xff]  ;;  %v251_v63 = vld [vmem:[%s1035_s0 + $0xc0] sm:$0xff]  ;;  %v237_v0 = vld [vmem:[%s1035_s0 + $0x50] sm:$0xff] }
  0x12   :  { %v252_v1 = vld [vmem:[%s1035_s0 + $0xc8] sm:$0xff]  ;;  %v238_v2 = vld [vmem:[%s1035_s0 + $0x58] sm:$0xff]  ;;  %v253_v3 = vld [vmem:[%s1035_s0 + $0xd0] sm:$0xff] }
  0x13   :  { %v239_v4 = vld [vmem:[%s1035_s0 + $0x60] sm:$0xff]  ;;  %v254_v5 = vld [vmem:[%s1035_s0 + $0xd8] sm:$0xff]  ;;  %v240_v6 = vld [vmem:[%s1035_s0 + $0x68] sm:$0xff] }
  0x14   :  { %629 = vmatmul.mubr.msk.f32.gmra.mrb[6].mxu0 %vm33_vm0, %v22_v10  ;;  %v255_v7 = vld [vmem:[%s1035_s0 + $0xe0] sm:$0xff]  ;;  %v256_v8 = vld [vmem:[%s1035_s0 + $0xe8] sm:$0xff]  ;;  %v257_v9 = vld [vmem:[%s1035_s0 + $0xf0] sm:$0xff] }
  0x15   :  { %631 = vmatprep.mubr.msk.f32.mxu0 %vm33_vm0, %v23_v11  ;;  %v258_v10 = vld [vmem:[%s1035_s0 + $0xf8] sm:$0xff]  ;;  %s802_s0 = smov [#allocation2]  }
  0x16   :  { %s522_s24 = sshll.u32 %s802_s0, 4  ;;  %s523_s24 = int_to_ptr.vmem [resolvable:$true] %s522_s24 }
  0x17   :  { %s778_s25 = scalar_lea.vmem %s523_s24, 4096  ;;  %p783_p1 = scmp.lt.s32.totalorder %s523_s24, %s523_s24 }
  0x18   :  { %632 = vmatmul.mubr.msk.f32.gmra.mrb[8].mxu0 %vm33_vm0, %v24_v12  ;;  %p779_p0 = scmp.ne.s32.totalorder %s523_s24, %s778_s25  ;;  %p784_p2 = scmp.lt.s32.totalorder %s778_s25, %s778_s25 }
  0x19   :  { %634 = vmatprep.mubr.msk.f32.mxu0 %vm33_vm0, %v25_v13 }
  0x1a   :  { %p785_p3 = por %p784_p2, %p783_p1 }
  0x1c   :  { %635 = vmatmul.mubr.msk.f32.gmra.mrb[10].mxu0 %vm33_vm0, %v26_v14  ;;  %p786_p4 = pnand %p785_p3, %p779_p0 }
  0x1d   :  { %637 = vmatprep.mubr.msk.f32.mxu0 %vm33_vm0, %v27_v15 }
  0x20   :  { %638 = vmatmul.mubr.msk.f32.gmra.mrb[12].mxu0 %vm33_vm0, %v28_v16 }
  0x21   :  { %640 = vmatprep.mubr.msk.f32.mxu0 %vm33_vm0, %v29_v17 }
  0x24   :  { %641 = vmatmul.mubr.msk.f32.gmra.mrb[14].mxu0 %vm33_vm0, %v30_v18 }
  0x25   :  { %675 = vmatprep.mubr.f32.mxu0 %v227_v20 }
  0xdb   :  { %v621_v21 = vpop.f32.mrb[0].mxu0 }
  0xdc   :  { %v148_v22 = vpop.f32.mrb[1].mxu0 }
  0xdd   :  { %v727_v23 = vpack.c.bf16 %v621_v21, %v148_v22 }
  0xdf   :  { %v624_v24 = vpop.f32.mrb[2].mxu0  ;;  %728 = vmatprep.subr.bf16.mxu0 %v727_v23  ;;  %759 = vmatprep.subr.bf16.mxu1 %v727_v23 }
  0xe0   :  { %v158_v25 = vpop.f32.mrb[3].mxu0  ;;  %730 = vmatpush3.bf16.msra.mxu0 %v727_v23  ;;  %767 = vmatpush3.bf16.msra.mxu1 %v727_v23 }
  0xe1   :  { %v731_v26 = vpack.c.bf16 %v624_v24, %v158_v25 }
  0xe3   :  { %v627_v27 = vpop.f32.mrb[4].mxu0  ;;  %732 = vmatprep.subr.bf16.mxu0 %v731_v26  ;;  %760 = vmatprep.subr.bf16.mxu1 %v731_v26 }
  0xe4   :  { %v168_v28 = vpop.f32.mrb[5].mxu0  ;;  %734 = vmatpush3.bf16.msra.mxu0 %v731_v26  ;;  %768 = vmatpush3.bf16.msra.mxu1 %v731_v26 }
  0xe5   :  { %v735_v29 = vpack.c.bf16 %v627_v27, %v168_v28 }
  0xe7   :  { %v630_v30 = vpop.f32.mrb[6].mxu0  ;;  %736 = vmatprep.subr.bf16.mxu0 %v735_v29  ;;  %761 = vmatprep.subr.bf16.mxu1 %v735_v29 }
  0xe8   :  { %v178_v31 = vpop.f32.mrb[7].mxu0  ;;  %738 = vmatpush3.bf16.msra.mxu0 %v735_v29  ;;  %769 = vmatpush3.bf16.msra.mxu1 %v735_v29 }
  0xe9   :  { %v739_v32 = vpack.c.bf16 %v630_v30, %v178_v31 }
  0xeb   :  { %v633_v33 = vpop.f32.mrb[8].mxu0  ;;  %740 = vmatprep.subr.bf16.mxu0 %v739_v32  ;;  %762 = vmatprep.subr.bf16.mxu1 %v739_v32 }
  0xec   :  { %v188_v34 = vpop.f32.mrb[9].mxu0  ;;  %742 = vmatpush3.bf16.msra.mxu0 %v739_v32  ;;  %770 = vmatpush3.bf16.msra.mxu1 %v739_v32 }
  0xed   :  { %v743_v35 = vpack.c.bf16 %v633_v33, %v188_v34 }
  0xef   :  { %v636_v36 = vpop.f32.mrb[10].mxu0  ;;  %744 = vmatprep.subr.bf16.mxu0 %v743_v35  ;;  %763 = vmatprep.subr.bf16.mxu1 %v743_v35 }
  0xf0   :  { %v198_v37 = vpop.f32.mrb[11].mxu0  ;;  %746 = vmatpush3.bf16.msra.mxu0 %v743_v35  ;;  %771 = vmatpush3.bf16.msra.mxu1 %v743_v35 }
  0xf1   :  { %v747_v38 = vpack.c.bf16 %v636_v36, %v198_v37 }
  0xf3   :  { %v639_v39 = vpop.f32.mrb[12].mxu0  ;;  %748 = vmatprep.subr.bf16.mxu0 %v747_v38  ;;  %764 = vmatprep.subr.bf16.mxu1 %v747_v38 }
  0xf4   :  { %v208_v40 = vpop.f32.mrb[13].mxu0  ;;  %750 = vmatpush3.bf16.msra.mxu0 %v747_v38  ;;  %772 = vmatpush3.bf16.msra.mxu1 %v747_v38 }
  0xf5   :  { %v751_v41 = vpack.c.bf16 %v639_v39, %v208_v40 }
  0xf7   :  { %v642_v42 = vpop.f32.mrb[14].mxu0  ;;  %752 = vmatprep.subr.bf16.mxu0 %v751_v41  ;;  %765 = vmatprep.subr.bf16.mxu1 %v751_v41 }
  0xf8   :  { %v218_v43 = vpop.f32.mrb[15].mxu0  ;;  %754 = vmatpush3.bf16.msra.mxu0 %v751_v41  ;;  %773 = vmatpush3.bf16.msra.mxu1 %v751_v41 }
  0xf9   :  { %v755_v44 = vpack.c.bf16 %v642_v42, %v218_v43 }
  0xfb   :  { %756 = vmatprep.subr.bf16.mxu0 %v755_v44  ;;  %766 = vmatprep.subr.bf16.mxu1 %v755_v44 }
  0xfc   :  { %758 = vmatpush3.bf16.msra.mxu0 %v755_v44  ;;  %774 = vmatpush3.bf16.msra.mxu1 %v755_v44 }
  0xff   :  { %697 = vmatmul.mubr.f32.vlgmr.msra.gmra.mrb[0].mxu1 %v242_v45  ;;  %676 = vmatmul.mubr.f32.vlgmr.msra.gmra.mrb[16].mxu0 %v228_v46 }
 0x100   :  { %699 = vmatprep.mubr.f32.mxu1 %v243_v47  ;;  %678 = vmatprep.mubr.f32.mxu0 %v229_v48 }
 0x103   :  { %700 = vmatmul.mubr.f32.gmra.mrb[2].mxu1 %v244_v49  ;;  %679 = vmatmul.mubr.f32.gmra.mrb[18].mxu0 %v230_v50 }
 0x104   :  { %702 = vmatprep.mubr.f32.mxu1 %v245_v51  ;;  %681 = vmatprep.mubr.f32.mxu0 %v231_v52 }
 0x107   :  { %703 = vmatmul.mubr.f32.gmra.mrb[4].mxu1 %v246_v53  ;;  %682 = vmatmul.mubr.f32.gmra.mrb[20].mxu0 %v232_v54 }
 0x108   :  { %705 = vmatprep.mubr.f32.mxu1 %v247_v55  ;;  %684 = vmatprep.mubr.f32.mxu0 %v233_v56 }
 0x10b   :  { %706 = vmatmul.mubr.f32.gmra.mrb[6].mxu1 %v248_v57  ;;  %685 = vmatmul.mubr.f32.gmra.mrb[22].mxu0 %v234_v58 }
 0x10c   :  { %708 = vmatprep.mubr.f32.mxu1 %v249_v59  ;;  %687 = vmatprep.mubr.f32.mxu0 %v235_v60 }
 0x10f   :  { %709 = vmatmul.mubr.f32.gmra.mrb[8].mxu1 %v250_v61  ;;  %688 = vmatmul.mubr.f32.gmra.mrb[24].mxu0 %v236_v62 }
 0x110   :  { %711 = vmatprep.mubr.f32.mxu1 %v251_v63  ;;  %690 = vmatprep.mubr.f32.mxu0 %v237_v0 }
 0x113   :  { %712 = vmatmul.mubr.f32.gmra.mrb[10].mxu1 %v252_v1  ;;  %691 = vmatmul.mubr.f32.gmra.mrb[26].mxu0 %v238_v2 }
 0x114   :  { %714 = vmatprep.mubr.f32.mxu1 %v253_v3  ;;  %693 = vmatprep.mubr.f32.mxu0 %v239_v4 }
 0x117   :  { %715 = vmatmul.mubr.f32.gmra.mrb[12].mxu1 %v254_v5  ;;  %694 = vmatmul.mubr.f32.gmra.mrb[28].mxu0 %v240_v6 }
 0x118   :  { %717 = vmatprep.mubr.f32.mxu1 %v255_v7 }
 0x11b   :  { %718 = vmatmul.mubr.f32.gmra.mrb[14].mxu1 %v256_v8 }
 0x11c   :  { %720 = vmatprep.mubr.f32.mxu1 %v257_v9 }
 0x11f   :  { %721 = vmatmul.mubr.f32.gmra.mrb[16].mxu1 %v258_v10 }
 0x1d2   :  { %v698_v11 = vpop.f32.mrb[0].mxu1  ;;  %v677_v12 = vpop.f32.mrb[16].mxu0 }
 0x1d3   :  { %500 = vst.msk [vmem:[#allocation2 + $0x78] sm:$0xff] %vm484_vm1, %v698_v11  ;;  %v395_v13 = vpop.f32.mrb[1].mxu1  ;;  %486 = vst.msk [vmem:[#allocation2 + $0x8] sm:$0xff] %vm484_vm1, %v677_v12  ;;  %v325_v14 = vpop.f32.mrb[17].mxu0 }
 0x1d4   :  { %499 = vst.msk [vmem:[#allocation2 + $0x70] sm:$0xff] %vm484_vm1, %v395_v13  ;;  %485 = vst.msk [vmem:[#allocation2] sm:$0xff] %vm484_vm1, %v325_v14 }
 0x1d6   :  { %v701_v15 = vpop.f32.mrb[2].mxu1  ;;  %v680_v16 = vpop.f32.mrb[18].mxu0 }
 0x1d7   :  { %502 = vst.msk [vmem:[#allocation2 + $0x88] sm:$0xff] %vm484_vm1, %v701_v15  ;;  %v405_v17 = vpop.f32.mrb[3].mxu1  ;;  %488 = vst.msk [vmem:[#allocation2 + $0x18] sm:$0xff] %vm484_vm1, %v680_v16  ;;  %v335_v18 = vpop.f32.mrb[19].mxu0 }
 0x1d8   :  { %501 = vst.msk [vmem:[#allocation2 + $0x80] sm:$0xff] %vm484_vm1, %v405_v17  ;;  %487 = vst.msk [vmem:[#allocation2 + $0x10] sm:$0xff] %vm484_vm1, %v335_v18 }
 0x1da   :  { %v704_v19 = vpop.f32.mrb[4].mxu1  ;;  %v683_v20 = vpop.f32.mrb[20].mxu0 }
 0x1db   :  { %504 = vst.msk [vmem:[#allocation2 + $0x98] sm:$0xff] %vm484_vm1, %v704_v19  ;;  %v415_v21 = vpop.f32.mrb[5].mxu1  ;;  %490 = vst.msk [vmem:[#allocation2 + $0x28] sm:$0xff] %vm484_vm1, %v683_v20  ;;  %v345_v22 = vpop.f32.mrb[21].mxu0 }
 0x1dc   :  { %503 = vst.msk [vmem:[#allocation2 + $0x90] sm:$0xff] %vm484_vm1, %v415_v21  ;;  %489 = vst.msk [vmem:[#allocation2 + $0x20] sm:$0xff] %vm484_vm1, %v345_v22 }
 0x1de   :  { %v707_v23 = vpop.f32.mrb[6].mxu1  ;;  %v686_v24 = vpop.f32.mrb[22].mxu0 }
 0x1df   :  { %506 = vst.msk [vmem:[#allocation2 + $0xa8] sm:$0xff] %vm484_vm1, %v707_v23  ;;  %v425_v25 = vpop.f32.mrb[7].mxu1  ;;  %492 = vst.msk [vmem:[#allocation2 + $0x38] sm:$0xff] %vm484_vm1, %v686_v24  ;;  %v355_v26 = vpop.f32.mrb[23].mxu0 }
 0x1e0   :  { %505 = vst.msk [vmem:[#allocation2 + $0xa0] sm:$0xff] %vm484_vm1, %v425_v25  ;;  %491 = vst.msk [vmem:[#allocation2 + $0x30] sm:$0xff] %vm484_vm1, %v355_v26 }
 0x1e2   :  { %v710_v27 = vpop.f32.mrb[8].mxu1  ;;  %v689_v28 = vpop.f32.mrb[24].mxu0 }
 0x1e3   :  { %508 = vst.msk [vmem:[#allocation2 + $0xb8] sm:$0xff] %vm484_vm1, %v710_v27  ;;  %v435_v29 = vpop.f32.mrb[9].mxu1  ;;  %494 = vst.msk [vmem:[#allocation2 + $0x48] sm:$0xff] %vm484_vm1, %v689_v28  ;;  %v365_v30 = vpop.f32.mrb[25].mxu0 }
 0x1e4   :  { %507 = vst.msk [vmem:[#allocation2 + $0xb0] sm:$0xff] %vm484_vm1, %v435_v29  ;;  %493 = vst.msk [vmem:[#allocation2 + $0x40] sm:$0xff] %vm484_vm1, %v365_v30 }
 0x1e6   :  { %v713_v31 = vpop.f32.mrb[10].mxu1  ;;  %v692_v32 = vpop.f32.mrb[26].mxu0 }
 0x1e7   :  { %510 = vst.msk [vmem:[#allocation2 + $0xc8] sm:$0xff] %vm484_vm1, %v713_v31  ;;  %v445_v33 = vpop.f32.mrb[11].mxu1  ;;  %496 = vst.msk [vmem:[#allocation2 + $0x58] sm:$0xff] %vm484_vm1, %v692_v32  ;;  %v375_v34 = vpop.f32.mrb[27].mxu0 }
 0x1e8   :  { %509 = vst.msk [vmem:[#allocation2 + $0xc0] sm:$0xff] %vm484_vm1, %v445_v33  ;;  %495 = vst.msk [vmem:[#allocation2 + $0x50] sm:$0xff] %vm484_vm1, %v375_v34 }
 0x1ea   :  { %v716_v35 = vpop.f32.mrb[12].mxu1  ;;  %v695_v36 = vpop.f32.mrb[28].mxu0 }
 0x1eb   :  { %512 = vst.msk [vmem:[#allocation2 + $0xd8] sm:$0xff] %vm484_vm1, %v716_v35  ;;  %v455_v37 = vpop.f32.mrb[13].mxu1  ;;  %498 = vst.msk [vmem:[#allocation2 + $0x68] sm:$0xff] %vm484_vm1, %v695_v36  ;;  %v385_v38 = vpop.f32.mrb[29].mxu0 }
 0x1ec   :  { %511 = vst.msk [vmem:[#allocation2 + $0xd0] sm:$0xff] %vm484_vm1, %v455_v37  ;;  %497 = vst.msk [vmem:[#allocation2 + $0x60] sm:$0xff] %vm484_vm1, %v385_v38 }
 0x1ee   :  { %v719_v39 = vpop.f32.mrb[14].mxu1 }
 0x1ef   :  { %514 = vst.msk [vmem:[#allocation2 + $0xe8] sm:$0xff] %vm484_vm1, %v719_v39  ;;  %v465_v40 = vpop.f32.mrb[15].mxu1 }
 0x1f0   :  { %513 = vst.msk [vmem:[#allocation2 + $0xe0] sm:$0xff] %vm484_vm1, %v465_v40 }
 0x1f2   :  { %v722_v41 = vpop.f32.mrb[16].mxu1 }
 0x1f3   :  { %516 = vst.msk [vmem:[#allocation2 + $0xf8] sm:$0xff] %vm484_vm1, %v722_v41  ;;  %v475_v42 = vpop.f32.mrb[17].mxu1 }
 0x1f4   :  { %515 = vst.msk [vmem:[#allocation2 + $0xf0] sm:$0xff] %vm484_vm1, %v475_v42 }
 0x1f5   :  { %789 = shalt.err (!%p786_p4)
}
 0x1f6   :  { %s790_s28 = scalar_lea.hbm %s1038_s3, 4096 }
 0x1f7   :  { %p791_p5 = scmp.ne.s32.totalorder %s1038_s3, %s790_s28  ;;  %p794_p6 = scmp.lt.u32.totalorder %s790_s28, %s1038_s3 }
 0x1f9   :  { %p796_p7 = pnand %p794_p6, %p791_p5 }
 0x1fb   :  { %799 = shalt.err (!%p796_p7)
}
 0x1fc   :  { %s803_s6 = smov 128   ;;  %s804_s7 = smov 8  }
 0x1fd   :  { %528 = dma.vmem_to_hbm [thread:$0]  %s523_s24, 4096, %s1038_s3, [#allocation3], %s803_s6, %s803_s6, %s804_s7  }
 0x1fe   :  { %800 = dma.done.wait [#allocation3], 4096  }
 0x1ff   :  { %801 = vsyncadd [#allocation3], 4294963200 }
 0x200   :  { %532 = vsyncpa [#allocation3], 1 }

</bundles_post_ra>
